<compile_context>
chip_gen: v7x
topology: tpu7x:2x2x1
jax: 0.10.0
libtpu: 0.0.40
codegen_flags: <defaults>
</compile_context>

<pallas_src>
import functools

import jax
import jax.numpy as jnp
import numpy as np
from jax import lax
from jax.experimental import pallas as pl
from jax.experimental.pallas import tpu as pltpu


def _nms_kernel(rel_ref, rep_ref, mask_ref, *, rel_thr, rep_thr):
    """(T, H, W) block: separable 3x3 max filter + thresholds -> int8 mask."""
    rep = rep_ref[...]          # (T, H, W) float
    rel = rel_ref[...]          # (T, H, W) float
    T, H, W = rep.shape

    neg_inf = jnp.asarray(-jnp.inf, dtype=rep.dtype)
    col = lax.broadcasted_iota(jnp.int32, (T, H, W), 2)
    row = lax.broadcasted_iota(jnp.int32, (T, H, W), 1)

    # Horizontal 3-max (stride 1, -inf padding as in MaxPool2d): only the
    # single wrapped column per shift needs masking.
    left = jnp.where(col > 0, jnp.roll(rep, 1, axis=2), neg_inf)        # rep[., ., j-1]
    right = jnp.where(col < W - 1, jnp.roll(rep, -1, axis=2), neg_inf)  # rep[., ., j+1]
    hmax = jnp.maximum(rep, jnp.maximum(left, right))

    # Vertical 3-max of the horizontal result == full 3x3 max.
    up = jnp.where(row > 0, jnp.roll(hmax, 1, axis=1), neg_inf)         # hmax[., i-1, .]
    down = jnp.where(row < H - 1, jnp.roll(hmax, -1, axis=1), neg_inf)  # hmax[., i+1, .]
    m = jnp.maximum(hmax, jnp.maximum(up, down))

    maxima = (rep == m) & (rep >= rep_thr) & (rel >= rel_thr)
    mask_ref[...] = maxima.astype(jnp.int8)


def nms_mask(reliability, repeatability, rel_thr=0.7, rep_thr=0.7):
    """Pallas-computed maxima mask, shape (B, C, H, W), dtype int8 (0/1)."""
    B, C, H, W = reliability.shape
    BC = B * C
    rel2 = reliability.reshape(BC, H, W)
    rep2 = repeatability.reshape(BC, H, W)

    itemsize = jnp.dtype(rep2.dtype).itemsize
    plane_bytes = H * W * itemsize

    # ~2 MiB of input per grid step: large enough to amortize per-step overhead
    # and stay near the HBM roofline, small enough that the double-buffered
    # working set fits the scoped VMEM of every generation (v5e/v6e/v7x).
    target_block_bytes = 2 * 1024 * 1024
    T = max(1, target_block_bytes // max(plane_bytes, 1))
    if BC > 1:
        # Keep at least two grid steps so v7x's two TensorCores both get work.
        T = min(T, -(-BC // 2))
    T = min(T, BC)

    n_steps = -(-BC // T)
    BC_pad = n_steps * T
    if BC_pad != BC:
        pad = ((0, BC_pad - BC), (0, 0), (0, 0))
        rel2 = jnp.pad(rel2, pad)
        rep2 = jnp.pad(rep2, pad)

    # Double-buffered working set: 2 inputs + 1 int8 output, 2 buffers each.
    block_in = T * H * W * itemsize
    block_out = T * H * W
    needed = 2 * (2 * block_in) + 2 * block_out + (8 << 20)
    vmem_limit = int(min(64 << 20, max(32 << 20, needed)))
    # TODO(synk): for planes too large to fit a (1, H, W) block in VMEM
    # (roughly H*W*4 > ~12 MiB), strip-tile H with a 1-row halo instead.
    # TODO(synk): when W < 128, lane utilization is W/128; packing planes
    # along the lane axis would need a wrapper-side transpose (extra HBM pass),
    # so it is not done here.

    out = pl.pallas_call(
        functools.partial(_nms_kernel, rel_thr=rel_thr, rep_thr=rep_thr),
        out_shape=jax.ShapeDtypeStruct((BC_pad, H, W), jnp.int8),
        grid=(n_steps,),
        in_specs=[
            pl.BlockSpec((T, H, W), lambda i: (i, 0, 0)),
            pl.BlockSpec((T, H, W), lambda i: (i, 0, 0)),
        ],
        out_specs=pl.BlockSpec((T, H, W), lambda i: (i, 0, 0)),
        compiler_params=pltpu.CompilerParams(
            dimension_semantics=("parallel",),
            vmem_limit_bytes=vmem_limit,
        ),
    )(rel2, rep2)

    return out[:BC].reshape(B, C, H, W)


def non_max_suppression(reliability, repeatability, rel_thr=0.7, rep_thr=0.7):
    """Mirrors NonMaxSuppression.forward: takes length-1 lists, returns (2, N)."""
    assert len(reliability) == len(repeatability) == 1
    rel, rep = reliability[0], repeatability[0]
    mask = nms_mask(rel, rep, rel_thr=rel_thr, rep_thr=rep_thr)
    # TODO(synk): `.nonzero()` has a data-dependent output shape; no Pallas
    # equivalent, so it runs in eager JAX on the kernel-produced int8 mask.
    idx = jnp.nonzero(mask)                 # (b, c, y, x) index arrays
    return jnp.stack(idx[2:4], axis=0)      # (2, N) = [y; x]


def _reference_mask(rel, rep, rel_thr=0.7, rep_thr=0.7):
    """Pure-JAX reference for the mask (maxpool via reduce_window)."""
    mx = lax.reduce_window(
        rep, -jnp.inf, lax.max,
        window_dimensions=(1, 1, 3, 3),
        window_strides=(1, 1, 1, 1),
        padding=((0, 0), (0, 0), (1, 1), (1, 1)),
    )
    return (rep == mx) & (rep >= rep_thr) & (rel >= rel_thr)


if __name__ == "__main__":
    B, C, H, W = 2, 4, 16, 16
    key = jax.random.PRNGKey(0)
    k1, k2 = jax.random.split(key)
    reliability = [jax.random.uniform(k1, (B, C, H, W), dtype=jnp.float32)]
    repeatability = [jax.random.uniform(k2, (B, C, H, W), dtype=jnp.float32)]

    # Run the Pallas kernel path.
    coords = non_max_suppression(reliability, repeatability)
    coords = jax.block_until_ready(coords)

    # Correctness check against a pure-JAX reference.
    mask_kernel = jax.block_until_ready(nms_mask(reliability[0], repeatability[0]))
    mask_ref = _reference_mask(reliability[0], repeatability[0])
    np.testing.assert_array_equal(np.asarray(mask_kernel) != 0, np.asarray(mask_ref))

    ref_idx = jnp.nonzero(mask_ref)
    ref_coords = jnp.stack(ref_idx[2:4], axis=0)
    np.testing.assert_array_equal(np.asarray(coords), np.asarray(ref_coords))

    print("KERNEL_OK")
</pallas_src>

<mosaic_0001>
module attributes {stable_mosaic.version = 11 : i64} {
  func.func @_nms_kernel(%arg0: i32, %arg1: memref<4x16x16xf32, #tpu.memory_space<vmem>>, %arg2: memref<4x16x16xf32, #tpu.memory_space<vmem>>, %arg3: memref<4x16x16xi8, #tpu.memory_space<vmem>>) attributes {dimension_semantics = [#tpu.dimension_semantics<parallel>], iteration_bounds = array<i64: 2>, scalar_prefetch = 0 : i64, scratch_operands = 0 : i64, tpu.core_type = #tpu.core_type<tc>, window_params = [{transform_indices = @transform_0, window_bounds = array<i64: 4, 16, 16>}, {transform_indices = @transform_1, window_bounds = array<i64: 4, 16, 16>}, {transform_indices = @transform_2, window_bounds = array<i64: 4, 16, 16>}]} {
    %c0 = arith.constant 0 : index
    %c0_0 = arith.constant 0 : index
    %c0_1 = arith.constant 0 : index
    %0 = vector.load %arg2[%c0, %c0_0, %c0_1] : memref<4x16x16xf32, #tpu.memory_space<vmem>>, vector<4x16x16xf32>
    %c0_2 = arith.constant 0 : index
    %c0_3 = arith.constant 0 : index
    %c0_4 = arith.constant 0 : index
    %1 = vector.load %arg1[%c0_2, %c0_3, %c0_4] : memref<4x16x16xf32, #tpu.memory_space<vmem>>, vector<4x16x16xf32>
    %2 = tpu.iota {dimensions = array<i32: 2>} : vector<4x16x16xi32>
    %3 = tpu.iota {dimensions = array<i32: 1>} : vector<4x16x16xi32>
    %c0_i32 = arith.constant 0 : i32
    %4 = vector.broadcast %c0_i32 : i32 to vector<4x16x16xi32>
    %5 = arith.cmpi sgt, %2, %4 : vector<4x16x16xi32>
    %6 = vector.extract_strided_slice %0 {offsets = [0, 0, 15], sizes = [4, 16, 1], strides = [1, 1, 1]} : vector<4x16x16xf32> to vector<4x16x1xf32>
    %7 = vector.extract_strided_slice %0 {offsets = [0, 0, 0], sizes = [4, 16, 15], strides = [1, 1, 1]} : vector<4x16x16xf32> to vector<4x16x15xf32>
    %8 = tpu.concatenate %6, %7 in 2 : vector<4x16x1xf32>, vector<4x16x15xf32> -> vector<4x16x16xf32>
    %cst = arith.constant 0xFF800000 : f32
    %9 = vector.broadcast %cst : f32 to vector<4x16x16xf32>
    %10 = arith.select %5, %8, %9 : vector<4x16x16xi1>, vector<4x16x16xf32>
    %c15_i32 = arith.constant 15 : i32
    %11 = vector.broadcast %c15_i32 : i32 to vector<4x16x16xi32>
    %12 = arith.cmpi slt, %2, %11 : vector<4x16x16xi32>
    %13 = vector.extract_strided_slice %0 {offsets = [0, 0, 1], sizes = [4, 16, 15], strides = [1, 1, 1]} : vector<4x16x16xf32> to vector<4x16x15xf32>
    %14 = vector.extract_strided_slice %0 {offsets = [0, 0, 0], sizes = [4, 16, 1], strides = [1, 1, 1]} : vector<4x16x16xf32> to vector<4x16x1xf32>
    %15 = tpu.concatenate %13, %14 in 2 : vector<4x16x15xf32>, vector<4x16x1xf32> -> vector<4x16x16xf32>
    %cst_5 = arith.constant 0xFF800000 : f32
    %16 = vector.broadcast %cst_5 : f32 to vector<4x16x16xf32>
    %17 = arith.select %12, %15, %16 : vector<4x16x16xi1>, vector<4x16x16xf32>
    %18 = arith.maximumf %10, %17 : vector<4x16x16xf32>
    %19 = arith.maximumf %0, %18 : vector<4x16x16xf32>
    %c0_i32_6 = arith.constant 0 : i32
    %20 = vector.broadcast %c0_i32_6 : i32 to vector<4x16x16xi32>
    %21 = arith.cmpi sgt, %3, %20 : vector<4x16x16xi32>
    %22 = vector.extract_strided_slice %19 {offsets = [0, 15, 0], sizes = [4, 1, 16], strides = [1, 1, 1]} : vector<4x16x16xf32> to vector<4x1x16xf32>
    %23 = vector.extract_strided_slice %19 {offsets = [0, 0, 0], sizes = [4, 15, 16], strides = [1, 1, 1]} : vector<4x16x16xf32> to vector<4x15x16xf32>
    %24 = tpu.concatenate %22, %23 in 1 : vector<4x1x16xf32>, vector<4x15x16xf32> -> vector<4x16x16xf32>
    %cst_7 = arith.constant 0xFF800000 : f32
    %25 = vector.broadcast %cst_7 : f32 to vector<4x16x16xf32>
    %26 = arith.select %21, %24, %25 : vector<4x16x16xi1>, vector<4x16x16xf32>
    %c15_i32_8 = arith.constant 15 : i32
    %27 = vector.broadcast %c15_i32_8 : i32 to vector<4x16x16xi32>
    %28 = arith.cmpi slt, %3, %27 : vector<4x16x16xi32>
    %29 = vector.extract_strided_slice %19 {offsets = [0, 1, 0], sizes = [4, 15, 16], strides = [1, 1, 1]} : vector<4x16x16xf32> to vector<4x15x16xf32>
    %30 = vector.extract_strided_slice %19 {offsets = [0, 0, 0], sizes = [4, 1, 16], strides = [1, 1, 1]} : vector<4x16x16xf32> to vector<4x1x16xf32>
    %31 = tpu.concatenate %29, %30 in 1 : vector<4x15x16xf32>, vector<4x1x16xf32> -> vector<4x16x16xf32>
    %cst_9 = arith.constant 0xFF800000 : f32
    %32 = vector.broadcast %cst_9 : f32 to vector<4x16x16xf32>
    %33 = arith.select %28, %31, %32 : vector<4x16x16xi1>, vector<4x16x16xf32>
    %34 = arith.maximumf %26, %33 : vector<4x16x16xf32>
    %35 = arith.maximumf %19, %34 : vector<4x16x16xf32>
    %36 = arith.cmpf oeq, %0, %35 : vector<4x16x16xf32>
    %cst_10 = arith.constant 0.699999988 : f32
    %37 = vector.broadcast %cst_10 : f32 to vector<4x16x16xf32>
    %38 = arith.cmpf oge, %0, %37 : vector<4x16x16xf32>
    %39 = arith.andi %36, %38 : vector<4x16x16xi1>
    %cst_11 = arith.constant 0.699999988 : f32
    %40 = vector.broadcast %cst_11 : f32 to vector<4x16x16xf32>
    %41 = arith.cmpf oge, %1, %40 : vector<4x16x16xf32>
    %42 = arith.andi %39, %41 : vector<4x16x16xi1>
    %43 = arith.extui %42 : vector<4x16x16xi1> to vector<4x16x16xi8>
    %c0_12 = arith.constant 0 : index
    %c0_13 = arith.constant 0 : index
    %c0_14 = arith.constant 0 : index
    %44 = vector.load %arg3[%c0_12, %c0_13, %c0_14] : memref<4x16x16xi8, #tpu.memory_space<vmem>>, vector<4x16x16xi8>
    tpu.vector_store %arg3[%c0_12, %c0_13, %c0_14], %43 {strides = array<i32>} : memref<4x16x16xi8, #tpu.memory_space<vmem>>, vector<4x16x16xi8>,
    return
  }
  func.func @transform_0(%arg0: i32) -> (i32, i32, i32) {
    %c0_i32 = arith.constant 0 : i32
    %c0_i32_0 = arith.constant 0 : i32
    %c0_i32_1 = arith.constant 0 : i32
    return %arg0, %c0_i32, %c0_i32_0 : i32, i32, i32
  }
  func.func @transform_1(%arg0: i32) -> (i32, i32, i32) {
    %c0_i32 = arith.constant 0 : i32
    %c0_i32_0 = arith.constant 0 : i32
    %c0_i32_1 = arith.constant 0 : i32
    return %arg0, %c0_i32, %c0_i32_0 : i32, i32, i32
  }
  func.func @transform_2(%arg0: i32) -> (i32, i32, i32) {
    %c0_i32 = arith.constant 0 : i32
    %c0_i32_0 = arith.constant 0 : i32
    %c0_i32_1 = arith.constant 0 : i32
    return %arg0, %c0_i32, %c0_i32_0 : i32, i32, i32
  }
}

</mosaic_0001>

<bundles_post_ra>
// kernel: tpu_custom_call.1
= control target key start
LH: loop header
LB: loop body
LE: loop exit
PB: predicated region body
PF: predicated region fallthrough
CT: control target
= control target key end

     0   :  { %7 = vsyncpa [#allocation3], 0  ;;  %s1422_s0 = inlined_call_operand.hbm [shape: f32[8,16,16], index: 0, kind: input, shape index: {}]   ;;  %s1423_s1 = inlined_call_operand.hbm [shape: f32[8,16,16], index: 1, kind: input, shape index: {}]   ;;  %s1424_s2 = inlined_call_operand.hbm [shape: s8[8,16,16], index: 2, kind: output, shape index: {}]  }
   0x1   :  { %9 = vsyncpa [#allocation3 + $0x1], 0 }
   0x2   :  { %10 = vsyncpa [#allocation6], 0 }
   0x3   :  { %12 = vsyncpa [#allocation6 + $0x1], 0 }
   0x4   :  { %13 = vsyncpa [#allocation4], 0 }
   0x5   :  { %15 = vsyncpa [#allocation4 + $0x1], 0  ;;  %s930_s9 = smov 0   ;;  %s932_s10 = smov 0  }
   0x6   :  { %s934_s11 = smov 0   ;;  %s936_s12 = smov 0  }
   0x7 LB: > { %s951_s13 = sadd.s32 4294967295, %s901_s12   ;;  %s684_s14 = sadd.s32 4294967294, %s901_s12   ;;  %s901_s12 = sphi %s936_s12, %s1455_s12   ;;  %s897_s11 = sphi %s934_s11, %s1454_s11   ;;  %s893_s10 = sphi %s932_s10, %s1453_s10   ;;  %s889_s9 = sphi %s930_s9, %s1452_s9  }
   0x8   : > { %s955_s15 = sadd.s32 1, %s901_s12   ;;  %s28_s16 = sadd.s32 1, %s897_s11 }
   0x9   : > { %s25_s17 = ssub.s32 %s901_s12, %s955_s15  ;;  %p35_p0 = scmp.ne.s32.totalorder %s897_s11, %s893_s10 }
   0xa   : > { %p26_p1 = scmp.eq.s32.totalorder %s25_s17, 0  ;;  %p36_p2 = scmp.eq.s32.totalorder %s901_s12, 0 }
   0xb   : > { %p41_p3 = scmp.ne.s32.totalorder %s893_s10, %s889_s9  ;;  %p42_p4 = scmp.eq.s32.totalorder %s951_s13, 0 }
   0xc   : > { %s967_s18 = scalar_select %p26_p1, %s897_s11, %s28_s16  }
   0xd   : > { %p969_p5 = por %p36_p2, %p35_p0  ;;  %p973_p6 = por %p42_p4, %p41_p3 }
   0xe   : > { %p91_p7 = scmp.eq.s32.totalorder %s951_s13, 1  ;;  %p97_p8 = scmp.eq.s32.totalorder %s684_s14, 1 }
   0xf   : > { %s1430_s20 = scalar_select %p973_p6, 1, 0 }
  0x10   : > { %p728_p10 = scmp.lt.s32.totalorder %s901_s12, 2  ;;  %p980_p11 = por %p91_p7, %p35_p0 }
  0x11   : > { %p984_p12 = por %p97_p8, %p41_p3  ;;  %s989_s23 = sand.u32 1, %s897_s11  }
  0x12   : > { %s1431_s21 = scalar_select %p980_p11, 1, 0 }
  0x13   : > { %s1432_s22 = scalar_select %p984_p12, 1, 0 }
  0x14   : > { %s706_s24 = sshll.u32 %s901_s12, 10  ;;  %s687_s25 = sshll.u32 %s989_s23, 6 }
  0x15   : > { %s998_s28 = scalar_lea.hbm %s1422_s0, %s706_s24  ;;  %s121_s29 = scalar_lea.vmem [#allocation2], %s687_s25 }
  0x16   : > { %s129_s30 = sshll.u32 %s121_s29, 4  ;;  %p1004_p13 = pnand %p728_p10, %p969_p5  ;;  %s1008_s30 = int_to_ptr.vmem [resolvable:$true] %s129_s30 }
  0x17   : > { %s118_s4 = scalar_lea.sflag [#allocation3], %s989_s23  ;;  %s771_s5 = scalar_lea.hbm %s998_s28, 1024 }
  0x18   : > { %p772_p0 = scmp.ne.s32.totalorder %s998_s28, %s771_s5  ;;  %p773_p1 = pneg %p1004_p13 }
  0x19   : > { %s776_s8 = scalar_lea.hbm %s1422_s0, 2048  ;;  %p777_p4 = scmp.lt.u32.totalorder %s998_s28, %s1422_s0 }
  0x1a   : > { %p774_p2 = pnand %p773_p1, %p772_p0  ;;  %p778_p5 = scmp.lt.u32.totalorder %s776_s8, %s771_s5 }
  0x1b   : > { %p780_p8 = scmp.lt.u32.totalorder %s771_s5, %s998_s28 }
  0x1c   : > { %p775_p3 = pneg %p774_p2  ;;  %p779_p7 = por %p778_p5, %p777_p4 }
  0x1e   : > { %p781_p10 = por %p780_p8, %p779_p7 }
  0x20   : > { %p782_p9 = pnand %p781_p10, %p775_p3 }
  0x22   : > { %785 = shalt.err (!%p782_p9)
}
  0x23   : > { %s786_s17 = scalar_lea.vmem %s1008_s30, 1024  ;;  %s903_s19 = smov [#allocation2]  }
  0x24   : > { %p787_p0 = scmp.ne.s32.totalorder %s1008_s30, %s786_s17  ;;  %s791_s26 = sshll.u32 %s903_s19, 4  ;;  %s792_s26 = int_to_ptr.vmem [resolvable:$false] %s791_s26 }
  0x25   : > { %s793_s27 = scalar_lea.vmem %s792_s26, 2048  ;;  %p794_p11 = scmp.lt.s32.totalorder %s1008_s30, %s792_s26 }
  0x26   : > { %p789_p2 = pnand %p787_p0, %p773_p1  ;;  %p795_p4 = scmp.lt.s32.totalorder %s793_s27, %s786_s17 }
  0x28   : > { %p790_p12 = pneg %p789_p2  ;;  %p796_p5 = por %p795_p4, %p794_p11 }
  0x2a   : > { %p797_p7 = pnand %p796_p5, %p790_p12 }
  0x2c   : > { %800 = shalt.err (!%p797_p7)
}
  0x2d   : > { %s904_s29 = smov 128   ;;  %s905_s5 = smov 8  }
  0x2e   : > { %720 = dma.hbm_to_vmem [thread:$0]  (!%p1004_p13), %s998_s28, 1024, %s1008_s30, %s118_s4, %s904_s29, %s904_s29, %s905_s5  }
  0x2f   : > { %p695_p9 = scmp.ge.s32.totalorder %s901_s12, 1  ;;  %p159_p11 = scmp.lt.s32.totalorder %s901_s12, 3 }
  0x30   : > { %s1052_s14 = scalar_lea.hbm %s1423_s1, %s706_s24  ;;  %s143_s16 = scalar_lea.vmem [#allocation5], %s687_s25 }
  0x31   : > { %p1043_p12 = pnand %p695_p9, %p159_p11  ;;  %s151_s17 = sshll.u32 %s143_s16, 4  ;;  %s1056_s17 = int_to_ptr.vmem [resolvable:$true] %s151_s17 }
  0x32   : > { %s140_s28 = scalar_lea.sflag [#allocation6], %s989_s23  ;;  %s801_s30 = scalar_lea.hbm %s1052_s14, 1024 }
  0x33   : > { %p802_p3 = scmp.ne.s32.totalorder %s1052_s14, %s801_s30  ;;  %s806_s24 = scalar_lea.hbm %s1423_s1, 2048 }
  0x34   : > { %p807_p0 = scmp.lt.u32.totalorder %s1052_s14, %s1423_s1  ;;  %p808_p2 = scmp.lt.u32.totalorder %s806_s24, %s801_s30 }
  0x35   : > { %p804_p8 = pnand %p802_p3, %p773_p1  ;;  %p810_p5 = scmp.lt.u32.totalorder %s801_s30, %s1052_s14 }
  0x36   : > { %p809_p4 = por %p808_p2, %p807_p0 }
  0x37   : > { %p805_p10 = pneg %p804_p8 }
  0x38   : > { %p811_p7 = por %p810_p5, %p809_p4 }
  0x3a   : > { %p812_p9 = pnand %p811_p7, %p805_p10 }
  0x3c   : > { %815 = shalt.err (!%p812_p9)
}
  0x3d   : > { %s816_s25 = scalar_lea.vmem %s1056_s17, 1024  ;;  %s906_s7 = smov [#allocation5]  }
  0x3e   : > { %p817_p11 = scmp.ne.s32.totalorder %s1056_s17, %s816_s25  ;;  %s821_s8 = sshll.u32 %s906_s7, 4  ;;  %s822_s8 = int_to_ptr.vmem [resolvable:$false] %s821_s8 }
  0x3f   : > { %s823_s16 = scalar_lea.vmem %s822_s8, 2048  ;;  %p824_p6 = scmp.lt.s32.totalorder %s1056_s17, %s822_s8 }
  0x40   : > { %p819_p3 = pnand %p817_p11, %p773_p1  ;;  %p825_p0 = scmp.lt.s32.totalorder %s823_s16, %s816_s25 }
  0x42   : > { %p820_p8 = pneg %p819_p3  ;;  %p826_p2 = por %p825_p0, %p824_p6 }
  0x44   : > { %p827_p4 = pnand %p826_p2, %p820_p8 }
  0x46   : > { %830 = shalt.err (!%p827_p4)
}
  0x47   : > { %723 = dma.hbm_to_vmem [thread:$0]  (!%p1004_p13), %s1052_s14, 1024, %s1056_s17, %s140_s28, %s904_s29, %s904_s29, %s905_s5  }
  0x48   : > { %163 = sbr.rel (%p1043_p12) target bundleno = 311 (0x137), region = 28  ;;  %s1090_s30 = sand.u32 (!%p1043_p12), 1, %s893_s10  }
  0x49   : > { %s696_s4 = sshll.u32 (!%p1043_p12), %s1090_s30, 6  ;;  %s166_s19 = scalar_lea.sflag (!%p1043_p12), [#allocation3], %s1090_s30 }
  0x4a   : > { %s1094_s3 = scalar_lea.vmem (!%p1043_p12), [#allocation2], %s696_s4  ;;  %p1435_p6 = scmp.ne.s32.totalorder (!%p1043_p12), %s1430_s20, 0 }
  0x4f   : > { %876 = dma.done.wait (%p1435_p6), %s166_s19, 1024  }
  0x50   : > { %878 = vsyncadd (%p1435_p6), %s166_s19, 4294966272  ;;  %s175_s23 = scalar_lea.sflag [#allocation6], %s1090_s30  ;;  %s178_s29 = scalar_lea.vmem [#allocation5], %s696_s4 }
  0x51   : > { %880 = dma.done.wait (%p1435_p6), %s175_s23, 1024  }
  0x52   : > { %882 = vsyncadd (%p1435_p6), %s175_s23, 4294966272  ;;  %v1105_v0 = vld [vmem:[%s178_s29 + $0x10] sm:$0xff]  ;;  %v1107_v1 = vld [vmem:[%s178_s29] sm:$0xff]  ;;  %s907_s5 = smov 113   ;;  %s908_s20 = smov 1   ;;  %v225_v28 = vlaneseq  ;;  %vm287_vm0 = vcmask 7168  }
  0x53   : > { %243 = vrot.lane.b32.xlu1 %v1105_v0, %s907_s5  ;;  %239 = vrot.lane.b32.xlu0 %v1107_v1, %s907_s5  ;;  %v1111_v2 = vld [vmem:[%s178_s29 + $0x18] sm:$0xff]  ;;  %v1113_v3 = vld [vmem:[%s178_s29 + $0x8] sm:$0xff]  ;;  %s909_s6 = smov 127   ;;  %s910_s14 = smov 15   ;;  %vm353_vm1 = vcmask 121856   ;;  %vm404_vm5 = vcmask 1040384  }
  0x54   : > { %v1117_v4 = vld [vmem:[%s178_s29 + $0x28] sm:$0xff]  ;;  %v1119_v5 = vld [vmem:[%s178_s29 + $0x20] sm:$0xff]  ;;  %v1123_v6 = vld [vmem:[%s178_s29 + $0x38] sm:$0xff]  ;;  %v1163_v31 = vand.u32 127, %v225_v28  ;;  %v1169_v34 = vshrl.u32 %v225_v28, 7  ;;  %vm1427_vm6 = vcmask 1046528  }
  0x55   : > { %v1125_v7 = vld [vmem:[%s178_s29 + $0x30] sm:$0xff]  ;;  %v1196_v53 = vld [vmem:[%s1094_s3] sm:$0xff]  ;;  %v1201_v57 = vld [vmem:[%s1094_s3 + $0x8] sm:$0xff]  ;;  %vm496_vm8 = vcmp.ge.f32.partialorder %v1107_v1, 0.7  ;;  %s698_s17 = sshll.u32 %s1090_s30, 4 }
  0x56   : > { %vm230_vm2 = vcmp.gt.s32.totalorder %v1163_v31, 0  ;;  %vm304_vm3 = vcmp.lt.s32.totalorder %v1163_v31, 15  ;;  %v1176_v38 = vadd.s32 8, %v1169_v34  ;;  %vm1428_vm4 = vcmp.gt.s32.totalorder %v1169_v34, 0  ;;  %s1323_s28 = scalar_lea.vmem [#allocation7], %s698_s17  ;;  %s710_s24 = sshll.u32 %s951_s13, 8 }
  0x57   : > { %245 = vrot.lane.b32.xlu1 %v1111_v2, %s907_s5  ;;  %241 = vrot.lane.b32.xlu0 %v1113_v3, %s907_s5  ;;  %vm497_vm9 = vcmp.ge.f32.partialorder %v1113_v3, 0.7  ;;  %vm512_vm10 = vcmp.ge.f32.partialorder %v1196_v53, 0.7  ;;  %vm513_vm11 = vcmp.ge.f32.partialorder %v1201_v57, 0.7  ;;  %s1372_s7 = scalar_lea.hbm %s1424_s2, %s710_s24 }
  0x58   : > { %vm434_vm7 = vcmp.lt.s32.totalorder %v1176_v38, 15  ;;  %vm498_vm12 = vcmp.ge.f32.partialorder %v1105_v0, 0.7  ;;  %s588_s26 = sshll.u32 %s1323_s28, 4  ;;  %s574_s13 = scalar_lea.sflag [#allocation4], %s1090_s30  ;;  %s1374_s26 = int_to_ptr.vmem [resolvable:$true] %s588_s26 }
  0x59   : > { %s831_s8 = scalar_lea.vmem %s1374_s26, 256  ;;  %p1449_p1 = scmp.ne.s32.totalorder %s1431_s21, 0 }
  0x5a   : > { %p832_p13 = scmp.ne.s32.totalorder %s1374_s26, %s831_s8  ;;  %s912_s16 = smov [#allocation7]  }
  0x5b   : > { %249 = vrot.lane.b32.xlu1 %v1117_v4, %s907_s5  ;;  %247 = vrot.lane.b32.xlu0 %v1119_v5, %s907_s5  ;;  %s835_s4 = sshll.u32 %s912_s16, 4  ;;  %s836_s4 = int_to_ptr.vmem [resolvable:$false] %s835_s4 }
  0x5c   : > { %p833_p12 = pnand %p832_p13, %p1449_p1  ;;  %s837_s19 = scalar_lea.vmem %s836_s4, 512 }
  0x5d   : > { %p838_p5 = scmp.lt.s32.totalorder %s1374_s26, %s836_s4  ;;  %p839_p7 = scmp.lt.s32.totalorder %s837_s19, %s831_s8 }
  0x5e   : > { %p834_p10 = pneg %p833_p12 }
  0x5f   : > { %253 = vrot.lane.b32.xlu1 %v1123_v6, %s907_s5  ;;  %251 = vrot.lane.b32.xlu0 %v1125_v7, %s907_s5  ;;  %p840_p9 = por %p839_p7, %p838_p5 }
  0x61   : > { %p841_p11 = pnand %p840_p9, %p834_p10 }
  0x63   : > { %265 = vrot.lane.b32.xlu1 %v1113_v3, %s908_s20  ;;  %263 = vrot.lane.b32.xlu0 %v1107_v1, %s908_s20 }
  0x67   : > { %269 = vrot.lane.b32.xlu1 %v1111_v2, %s908_s20  ;;  %267 = vrot.lane.b32.xlu0 %v1105_v0, %s908_s20 }
  0x6b   : > { %273 = vrot.lane.b32.xlu1 %v1117_v4, %s908_s20  ;;  %271 = vrot.lane.b32.xlu0 %v1119_v5, %s908_s20 }
  0x6f   : > { %277 = vrot.lane.b32.xlu1 %v1123_v6, %s908_s20  ;;  %275 = vrot.lane.b32.xlu0 %v1125_v7, %s908_s20 }
  0x73   : > { %307 = vrot.lane.b32.xlu1 %v1113_v3, %s909_s6  ;;  %305 = vrot.lane.b32.xlu0 %v1107_v1, %s909_s6 }
  0x77   : > { %311 = vrot.lane.b32.xlu1 %v1111_v2, %s909_s6  ;;  %309 = vrot.lane.b32.xlu0 %v1105_v0, %s909_s6 }
  0x7b   : > { %315 = vrot.lane.b32.xlu1 %v1117_v4, %s909_s6  ;;  %313 = vrot.lane.b32.xlu0 %v1119_v5, %s909_s6 }
  0x7f   : > { %319 = vrot.lane.b32.xlu1 %v1123_v6, %s909_s6  ;;  %317 = vrot.lane.b32.xlu0 %v1125_v7, %s909_s6 }
  0x83   : > { %331 = vrot.lane.b32.xlu1 %v1113_v3, %s910_s14  ;;  %329 = vrot.lane.b32.xlu0 %v1107_v1, %s910_s14 }
  0x87   : > { %335 = vrot.lane.b32.xlu1 %v1111_v2, %s910_s14  ;;  %333 = vrot.lane.b32.xlu0 %v1105_v0, %s910_s14 }
  0x8b   : > { %339 = vrot.lane.b32.xlu1 %v1117_v4, %s910_s14  ;;  %337 = vrot.lane.b32.xlu0 %v1119_v5, %s910_s14 }
  0x8f   : > { %343 = vrot.lane.b32.xlu1 %v1123_v6, %s910_s14  ;;  %341 = vrot.lane.b32.xlu0 %v1125_v7, %s910_s14 }
  0xc5   : > { %v244_v8 = vpop.permute.xlu1 %243  ;;  %v240_v9 = vpop.permute.xlu0 %239 }
  0xc9   : > { %v246_v10 = vpop.permute.xlu1 %245  ;;  %v242_v11 = vpop.permute.xlu0 %241 }
  0xcd   : > { %v250_v12 = vpop.permute.xlu1 %249  ;;  %v248_v13 = vpop.permute.xlu0 %247 }
  0xd1   : > { %v1153_v14 = vpop.permute.xlu1 %253  ;;  %v1155_v15 = vpop.permute.xlu0 %251 }
  0xd5   : > { %v266_v16 = vpop.permute.xlu1 %265  ;;  %v264_v17 = vpop.permute.xlu0 %263 }
  0xd6   : > { %v289_v35 = vsel %vm287_vm0, %v242_v11, %v266_v16  ;;  %v288_v36 = vsel %vm287_vm0, %v240_v9, %v264_v17 }
  0xd7   : > { %v297_v43 = vsel %vm230_vm2, %v289_v35, -inf  ;;  %v296_v44 = vsel %vm230_vm2, %v288_v36, -inf }
  0xd9   : > { %v270_v18 = vpop.permute.xlu1 %269  ;;  %v268_v19 = vpop.permute.xlu0 %267 }
  0xda   : > { %v291_v40 = vsel %vm287_vm0, %v246_v10, %v270_v18  ;;  %v290_v47 = vsel %vm287_vm0, %v244_v8, %v268_v19 }
  0xdb   : > { %v299_v51 = vsel %vm230_vm2, %v291_v40, -inf  ;;  %v298_v61 = vsel %vm230_vm2, %v290_v47, -inf }
  0xdd   : > { %v274_v20 = vpop.permute.xlu1 %273  ;;  %v272_v21 = vpop.permute.xlu0 %271 }
  0xde   : > { %v293_v48 = vsel %vm287_vm0, %v250_v12, %v274_v20  ;;  %v292_v52 = vsel %vm287_vm0, %v248_v13, %v272_v21 }
  0xdf   : > { %v1211_v62 = vsel %vm230_vm2, %v293_v48, -inf  ;;  %v300_v13 = vsel %vm230_vm2, %v292_v52, -inf  ;;  %v219_v48 = vld [vmem:[%s1094_s3 + $0x10] sm:$0xff] }
  0xe1   : > { %v278_v22 = vpop.permute.xlu1 %277  ;;  %v1157_v23 = vpop.permute.xlu0 %275 }
  0xe2   : > { %v295_v16 = vsel %vm287_vm0, %v1153_v14, %v278_v22 }
  0xe5   : > { %v308_v24 = vpop.permute.xlu1 %307  ;;  %v306_v25 = vpop.permute.xlu0 %305 }
  0xe9   : > { %v312_v26 = vpop.permute.xlu1 %311  ;;  %v310_v27 = vpop.permute.xlu0 %309 }
  0xed   : > { %v1159_v29 = vpop.permute.xlu1 %315  ;;  %v1161_v30 = vpop.permute.xlu0 %313 }
  0xf1   : > { %v1165_v32 = vpop.permute.xlu1 %319  ;;  %v1167_v33 = vpop.permute.xlu0 %317 }
  0xf5   : > { %v332_v37 = vpop.permute.xlu1 %331  ;;  %v330_v39 = vpop.permute.xlu0 %329 }
  0xf6   : > { %v355_v41 = vsel %vm353_vm1, %v308_v24, %v332_v37  ;;  %v354_v42 = vsel %vm353_vm1, %v306_v25, %v330_v39 }
  0xf7   : > { %v363_v45 = vsel %vm304_vm3, %v355_v41, -inf  ;;  %v362_v46 = vsel %vm304_vm3, %v354_v42, -inf }
  0xf8   : > { %v371_v49 = vmax.f32 %v297_v43, %v363_v45  ;;  %v370_v50 = vmax.f32 %v296_v44, %v362_v46 }
  0xf9   : > { %v336_v54 = vpop.permute.xlu1 %335  ;;  %v334_v55 = vpop.permute.xlu0 %333 }
  0xfa   : > { %v379_v56 = vmax.f32 %v1113_v3, %v371_v49  ;;  %v378_v58 = vmax.f32 %v1107_v1, %v370_v50  ;;  %v357_v59 = vsel %vm353_vm1, %v312_v26, %v336_v54  ;;  %v356_v60 = vsel %vm353_vm1, %v310_v27, %v334_v55 }
  0xfb   : > { %v365_v63 = vsel %vm304_vm3, %v357_v59, -inf  ;;  %v364_v8 = vsel %vm304_vm3, %v356_v60, -inf }
  0xfc   : > { %v392_v9 = vrot.slane %v379_v56, 7  ;;  %v437_v10 = vrot.slane %v379_v56, 1  ;;  %v405_v11 = vrot.slane %v378_v58, 7  ;;  %v436_v12 = vrot.slane %v378_v58, 1 }
  0xfd   : > { %v373_v17 = vmax.f32 %v299_v51, %v365_v63  ;;  %v372_v18 = vmax.f32 %v298_v61, %v364_v8  ;;  %v340_v19 = vpop.permute.xlu1 %339  ;;  %v338_v20 = vpop.permute.xlu0 %337  ;;  %v294_v63 = vsel %vm287_vm0, %v1155_v15, %v1157_v23  ;;  %v303_v23 = vsel %vm230_vm2, %v295_v16, -inf }
  0xfe   : > { %v406_v21 = vsel %vm404_vm5, %v405_v11, %v392_v9  ;;  %v421_v24 = vsel %vm404_vm5, %v392_v9, %v405_v11  ;;  %v438_v25 = vsel %vm1427_vm6, %v436_v12, %v437_v10  ;;  %v460_v26 = vsel %vm1427_vm6, %v437_v10, %v436_v12 }
  0xff   : > { %v425_v27 = vsel %vm1428_vm4, %v421_v24, -inf  ;;  %v465_v14 = vsel %vm434_vm7, %v460_v26, -inf  ;;  %v381_v22 = vmax.f32 %v1111_v2, %v373_v17  ;;  %v380_v28 = vmax.f32 %v1105_v0, %v372_v18 }
 0x100   : > { %v472_v35 = vmax.f32 %v425_v27, %v438_v25  ;;  %v473_v36 = vmax.f32 %v406_v21, %v465_v14  ;;  %v359_v37 = vsel %vm353_vm1, %v1159_v29, %v340_v19  ;;  %v358_v39 = vsel %vm353_vm1, %v1161_v30, %v338_v20  ;;  %v221_v25 = vld [vmem:[%s1094_s3 + $0x20] sm:$0xff] }
 0x101   : > { %v393_v40 = vrot.slane %v381_v22, 7  ;;  %v440_v41 = vrot.slane %v381_v22, 1  ;;  %v407_v42 = vrot.slane %v380_v28, 7  ;;  %v439_v43 = vrot.slane %v380_v28, 1  ;;  %v344_v51 = vpop.permute.xlu1 %343  ;;  %v342_v52 = vpop.permute.xlu0 %341 }
 0x102   : > { %v480_v44 = vmax.f32 %v378_v58, %v472_v35  ;;  %v481_v45 = vmax.f32 %v379_v56, %v473_v36  ;;  %v367_v46 = vsel %vm304_vm3, %v359_v37, -inf  ;;  %v366_v47 = vsel %vm304_vm3, %v358_v39, -inf  ;;  %v220_v56 = vld [vmem:[%s1094_s3 + $0x18] sm:$0xff]  ;;  %v222_v37 = vld [vmem:[%s1094_s3 + $0x28] sm:$0xff] }
 0x103   : > { %v408_v29 = vsel %vm404_vm5, %v407_v42, %v393_v40  ;;  %v422_v30 = vsel %vm404_vm5, %v393_v40, %v407_v42  ;;  %v441_v49 = vsel %vm1427_vm6, %v439_v43, %v440_v41  ;;  %v461_v50 = vsel %vm1427_vm6, %v440_v41, %v439_v43 }
 0x104   : > { %vm488_vm14 = vcmp.eq.f32.partialorder %v1107_v1, %v480_v44  ;;  %vm489_vm15 = vcmp.eq.f32.partialorder %v1113_v3, %v481_v45  ;;  %v427_v54 = vsel %vm1428_vm4, %v422_v30, -inf  ;;  %v467_v55 = vsel %vm434_vm7, %v461_v50, -inf }
 0x105   : > { %vm504_vm13 = vmand %vm488_vm14, %vm496_vm8  ;;  %v474_v58 = vmax.f32 %v427_v54, %v441_v49  ;;  %v475_v59 = vmax.f32 %v408_v29, %v467_v55  ;;  %v375_v60 = vmax.f32 %v1211_v62, %v367_v46  ;;  %v374_v61 = vmax.f32 %v300_v13, %v366_v47 }
 0x106   : > { %vm505_vm6 = vmand %vm489_vm15, %vm497_vm9  ;;  %vm514_vm4 = vcmp.ge.f32.partialorder %v219_v48, 0.7  ;;  %v361_v8 = vsel %vm353_vm1, %v1165_v32, %v344_v51  ;;  %v360_v1 = vsel %vm353_vm1, %v1167_v33, %v342_v52  ;;  %vm564_vm8 = vcmask 123904  }
 0x107   : > { %vm1270_vm14 = vmand %vm504_vm13, %vm512_vm10  ;;  %v482_v9 = vmax.f32 %v380_v28, %v474_v58  ;;  %v483_v10 = vmax.f32 %v381_v22, %v475_v59  ;;  %v383_v15 = vmax.f32 %v1117_v4, %v375_v60  ;;  %v382_v3 = vmax.f32 %v1119_v5, %v374_v61 }
 0x108   : > { %vm521_vm0 = vmand %vm505_vm6, %vm513_vm11  ;;  %vm515_vm1 = vcmp.ge.f32.partialorder %v220_v56, 0.7  ;;  %v369_v32 = vsel %vm304_vm3, %v361_v8, -inf  ;;  %v368_v33 = vsel %vm304_vm3, %v360_v1, -inf  ;;  %v302_v57 = vsel %vm230_vm2, %v294_v63, -inf }
 0x109   : > { %vm528_vm9 = vmpackc.low %vm521_vm0, %vm1270_vm14  ;;  %vm490_vm10 = vcmp.eq.f32.partialorder %v1105_v0, %v482_v9  ;;  %vm491_vm13 = vcmp.eq.f32.partialorder %v1111_v2, %v483_v10  ;;  %v394_v53 = vrot.slane %v383_v15, 7  ;;  %v443_v11 = vrot.slane %v383_v15, 1 }
 0x10a   : > { %vm529_vm6 = vmpackc.even %vm528_vm9, %vm528_vm9  ;;  %v409_v12 = vrot.slane %v382_v3, 7  ;;  %v442_v13 = vrot.slane %v382_v3, 1  ;;  %v377_v16 = vmax.f32 %v303_v23, %v369_v32  ;;  %v911_v17 = vmov 0  }
 0x10b   : > { %v536_v18 = vsel %vm529_vm6, 16843009, %v911_v17  ;;  %vm506_vm3 = vmand %vm490_vm10, %vm498_vm12  ;;  %vm500_vm11 = vcmp.ge.f32.partialorder %v1119_v5, 0.7  ;;  %vm501_vm15 = vcmp.ge.f32.partialorder %v1117_v4, 0.7  ;;  %v376_v19 = vmax.f32 %v302_v57, %v368_v33 }
 0x10c   : > { %v540_v20 = vunpack.c.0.s8 %v536_v18  ;;  %v541_v31 = vunpack.c.1.s8 %v536_v18  ;;  %vm1438_vm2 = vcmp.ge.f32.partialorder %v1111_v2, 0.7  ;;  %v410_v21 = vsel %vm404_vm5, %v409_v12, %v394_v53  ;;  %vm1303_vm12 = vmand %vm506_vm3, %vm514_vm4 }
 0x10d   : > { %vm507_vm14 = vmand %vm491_vm13, %vm1438_vm2  ;;  %v423_v24 = vsel %vm404_vm5, %v394_v53, %v409_v12  ;;  %vm1441_vm0 = vcmp.gt.s32.totalorder %v1169_v34, 0  ;;  %vm1442_vm9 = vcmask 1046528   ;;  %v385_v2 = vmax.f32 %v1123_v6, %v377_v16 }
 0x10e   : > { %v429_v26 = vsel %vm1441_vm0, %v423_v24, -inf  ;;  %v444_v27 = vsel %vm1442_vm9, %v442_v13, %v443_v11  ;;  %vm1443_vm10 = vmmov %vm1442_vm9  ;;  %v548_v22 = vpack.c.b16 %v540_v20, %v540_v20  ;;  %v550_v28 = vpack.c.b16 %v541_v31, %v541_v31 }
 0x10f   : > { %v462_v14 = vsel %vm1443_vm10, %v443_v11, %v442_v13  ;;  %vm523_vm13 = vmand %vm507_vm14, %vm515_vm1  ;;  %v476_v36 = vmax.f32 %v429_v26, %v444_v27  ;;  %v395_v40 = vrot.slane %v385_v2, 7  ;;  %v446_v41 = vrot.slane %v385_v2, 1 }
 0x110   : > { %v469_v35 = vsel %vm434_vm7, %v462_v14, -inf  ;;  %vm530_vm4 = vmpackc.low %vm523_vm13, %vm1303_vm12  ;;  %v384_v42 = vmax.f32 %v1125_v7, %v376_v19  ;;  %v549_v43 = vpack.c.b8 %v548_v22, %v548_v22  ;;  %v551_v44 = vpack.c.b8 %v550_v28, %v550_v28 }
 0x111   : > { %v477_v39 = vmax.f32 %v410_v21, %v469_v35  ;;  %vm531_vm6 = vmpackc.even %vm530_vm4, %vm530_vm4  ;;  %vm516_vm3 = vcmp.ge.f32.partialorder %v221_v25, 0.7  ;;  %v484_v45 = vmax.f32 %v382_v3, %v476_v36  ;;  %vm517_vm1 = vcmp.ge.f32.partialorder %v222_v37, 0.7 }
 0x112   : > { %v537_v46 = vsel %vm531_vm6, 16843009, %v911_v17  ;;  %v411_v48 = vrot.slane %v384_v42, 7  ;;  %v445_v29 = vrot.slane %v384_v42, 1  ;;  %565 = vst.msk [vmem:[%s1323_s28] sm:$0x3] %vm564_vm8, %v549_v43  ;;  %vm1444_vm0 = vmmov %vm1442_vm9 }
 0x113   : > { %v485_v47 = vmax.f32 %v383_v15, %v477_v39  ;;  %566 = vst.msk [vmem:[%s1323_s28 + $0x2] sm:$0x3] %vm564_vm8, %v551_v44  ;;  %v542_v30 = vunpack.c.0.s8 %v537_v46  ;;  %v543_v49 = vunpack.c.1.s8 %v537_v46  ;;  %vm492_vm2 = vcmp.eq.f32.partialorder %v1119_v5, %v484_v45  ;;  %vm1446_vm13 = vmmov %vm1444_vm0 }
 0x114   : > { %vm508_vm12 = vmand %vm492_vm2, %vm500_vm11  ;;  %v412_v50 = vsel %vm404_vm5, %v411_v48, %v395_v40  ;;  %v424_v51 = vsel %vm404_vm5, %v395_v40, %v411_v48  ;;  %v447_v52 = vsel %vm1444_vm0, %v445_v29, %v446_v41  ;;  %vm1445_vm10 = vcmp.gt.s32.totalorder %v1169_v34, 0  ;;  %v224_v34 = vld [vmem:[%s1094_s3 + $0x38] sm:$0xff] }
 0x115   : > { %vm493_vm14 = vcmp.eq.f32.partialorder %v1117_v4, %v485_v47  ;;  %v552_v54 = vpack.c.b16 %v542_v30, %v542_v30  ;;  %v554_v55 = vpack.c.b16 %v543_v49, %v543_v49  ;;  %v431_v56 = vsel %vm1445_vm10, %v424_v51, -inf  ;;  %vm1342_vm11 = vmand %vm508_vm12, %vm516_vm3  ;;  %v223_v4 = vld [vmem:[%s1094_s3 + $0x30] sm:$0xff] }
 0x116   : > { %vm509_vm9 = vmand %vm493_vm14, %vm501_vm15  ;;  %v463_v5 = vsel %vm1446_vm13, %v446_v41, %v445_v29  ;;  %v478_v60 = vmax.f32 %v431_v56, %v447_v52  ;;  %vm502_vm4 = vcmp.ge.f32.partialorder %v1125_v7, 0.7  ;;  %vm518_vm3 = vcmp.ge.f32.partialorder %v223_v4, 0.7 }
 0x117   : > { %v471_v59 = vsel %vm434_vm7, %v463_v5, -inf  ;;  %v553_v61 = vpack.c.b8 %v552_v54, %v552_v54  ;;  %v555_v63 = vpack.c.b8 %v554_v55, %v554_v55  ;;  %vm525_vm5 = vmand %vm509_vm9, %vm517_vm1  ;;  %vm503_vm7 = vcmp.ge.f32.partialorder %v1123_v6, 0.7 }
 0x118   : > { %v479_v8 = vmax.f32 %v412_v50, %v471_v59  ;;  %vm532_vm15 = vmpackc.low %vm525_vm5, %vm1342_vm11  ;;  %v486_v1 = vmax.f32 %v384_v42, %v478_v60  ;;  %vm519_vm2 = vcmp.ge.f32.partialorder %v224_v34, 0.7 }
 0x119   : > { %567 = vst.msk [vmem:[%s1323_s28 + $0x4] sm:$0x3] %vm564_vm8, %v553_v61  ;;  %568 = vst.msk [vmem:[%s1323_s28 + $0x6] sm:$0x3] %vm564_vm8, %v555_v63 }
 0x11a   : > { %vm533_vm6 = vmpackc.even %vm532_vm15, %vm532_vm15  ;;  %v487_v38 = vmax.f32 %v385_v2, %v479_v8  ;;  %vm494_vm1 = vcmp.eq.f32.partialorder %v1125_v7, %v486_v1 }
 0x11b   : > { %v538_v62 = vsel %vm533_vm6, 16843009, %v911_v17  ;;  %vm510_vm12 = vmand %vm494_vm1, %vm502_vm4 }
 0x11c   : > { %v544_v9 = vunpack.c.0.s8 %v538_v62  ;;  %v545_v10 = vunpack.c.1.s8 %v538_v62  ;;  %vm495_vm14 = vcmp.eq.f32.partialorder %v1123_v6, %v487_v38  ;;  %vm526_vm9 = vmand %vm510_vm12, %vm518_vm3 }
 0x11d   : > { %vm511_vm0 = vmand %vm495_vm14, %vm503_vm7 }
 0x11e   : > { %v556_v15 = vpack.c.b16 %v544_v9, %v544_v9  ;;  %v558_v3 = vpack.c.b16 %v545_v10, %v545_v10  ;;  %vm527_vm10 = vmand %vm511_vm0, %vm519_vm2 }
 0x11f   : > { %vm534_vm13 = vmpackc.low %vm527_vm10, %vm526_vm9 }
 0x120   : > { %v557_v23 = vpack.c.b8 %v556_v15, %v556_v15  ;;  %v559_v32 = vpack.c.b8 %v558_v3, %v558_v3  ;;  %vm535_vm11 = vmpackc.even %vm534_vm13, %vm534_vm13 }
 0x121   : > { %v539_v6 = vsel %vm535_vm11, 16843009, %v911_v17 }
 0x122   : > { %569 = vst.msk [vmem:[%s1323_s28 + $0x8] sm:$0x3] %vm564_vm8, %v557_v23  ;;  %570 = vst.msk [vmem:[%s1323_s28 + $0xa] sm:$0x3] %vm564_vm8, %v559_v32  ;;  %v546_v7 = vunpack.c.0.s8 %v539_v6  ;;  %v547_v33 = vunpack.c.1.s8 %v539_v6 }
 0x124   : > { %v560_v53 = vpack.c.b16 %v546_v7, %v546_v7  ;;  %v562_v11 = vpack.c.b16 %v547_v33, %v547_v33 }
 0x126   : > { %v561_v57 = vpack.c.b8 %v560_v53, %v560_v53  ;;  %v563_v12 = vpack.c.b8 %v562_v11, %v562_v11 }
 0x128   : > { %571 = vst.msk [vmem:[%s1323_s28 + $0xc] sm:$0x3] %vm564_vm8, %v561_v57  ;;  %572 = vst.msk [vmem:[%s1323_s28 + $0xe] sm:$0x3] %vm564_vm8, %v563_v12 }
 0x129   : > { %844 = shalt.err (!%p841_p11)
}
 0x12a   : > { %s845_s3 = scalar_lea.hbm %s1372_s7, 256  ;;  %s849_s5 = scalar_lea.hbm %s1424_s2, 512 }
 0x12b   : > { %p846_p3 = scmp.ne.s32.totalorder %s1372_s7, %s845_s3  ;;  %p850_p2 = scmp.lt.u32.totalorder %s1372_s7, %s1424_s2 }
 0x12c   : > { %p851_p4 = scmp.lt.u32.totalorder %s849_s5, %s845_s3  ;;  %p853_p13 = scmp.lt.u32.totalorder %s845_s3, %s1372_s7 }
 0x12d   : > { %p847_p8 = pnand %p846_p3, %p1449_p1 }
 0x12e   : > { %p852_p6 = por %p851_p4, %p850_p2 }
 0x12f   : > { %p848_p0 = pneg %p847_p8 }
 0x130   : > { %p854_p12 = por %p853_p13, %p852_p6 }
 0x132   : > { %p855_p10 = pnand %p854_p12, %p848_p0 }
 0x134   : > { %858 = shalt.err (!%p855_p10)
}
 0x135   : > { %s913_s14 = smov 32   ;;  %s914_s17 = smov 2  }
 0x136   : > { %715 = dma.vmem_to_hbm [thread:$0]  (%p1449_p1), %s1374_s26, 256, %s1372_s7, %s574_s13, %s913_s14, %s913_s14, %s914_s17  }
 0x137 PF: > { %s603_s28 = sand.u32 1, %s889_s9   ;;  %p1450_p5 = scmp.ne.s32.totalorder %s1432_s22, 0 }
 0x138   : > { %p1451_p7 = scmp.ge.s32.totalorder %s901_s12, 2  ;;  %s604_s24 = scalar_lea.sflag [#allocation4], %s603_s28 }
 0x13a   : > { %p725_p9 = pnand %p1451_p7, %p1450_p5 }
 0x13c   : > { %884 = dma.done.wait (!%p725_p9), %s604_s24, 256  }
 0x13d   : > { %886 = vsyncadd (!%p725_p9), %s604_s24, 4294967040  ;;  %p18_p11 = scmp.ge.s32.totalorder %s955_s15, 4   ;;  %s1452_s9 = smov %s893_s10 }
 0x13e   : > { %s1453_s10 = smov %s897_s11  ;;  %s1454_s11 = smov %s967_s18 }
 0x13f   : > { %s1455_s12 = smov %s955_s15  ;;  %20 = sbr.rel (!%p18_p11) target bundleno = 7 (0x7), region = 86 }
 0x146   :  { %609 = vsyncpa [#allocation3], 1 }
 0x147   :  { %611 = vsyncpa [#allocation3 + $0x1], 1 }
 0x148   :  { %612 = vsyncpa [#allocation6], 1 }
 0x149   :  { %614 = vsyncpa [#allocation6 + $0x1], 1 }
 0x14a   :  { %615 = vsyncpa [#allocation4], 1 }
 0x14b   :  { %617 = vsyncpa [#allocation4 + $0x1], 1 }

</bundles_post_ra>
